<compile_context>
chip_gen: v6e
topology: v6e:2x2x1
jax: 0.10.0
libtpu: 0.0.40
codegen_flags: <defaults>
</compile_context>

<pallas_src>
import jax
import jax.numpy as jnp
from jax.experimental import pallas as pl
from jax.experimental.pallas import tpu as pltpu


def _round_up(x, m):
    return (x + m - 1) // m * m


def _vmem_cap_bytes():
    try:
        info = pltpu.get_tpu_info()
        cap = int(getattr(info, "vmem_capacity_bytes", 64 << 20))
    except Exception:
        cap = 64 << 20
    return (cap * 3) // 4  # leave ~25% headroom


# --------------------------------------------------------------------------
# Prologue: down = x @ Wd^T   (tiny: r is padded to 128 lanes)
# --------------------------------------------------------------------------
def _lora_down_kernel(x_ref, wd_ref, dn_ref, acc_ref):
    # x_ref: (tm, tk)   wd_ref: (tk, r_pad)   dn_ref: (tm, r_pad)
    k = pl.program_id(1)
    nk = pl.num_programs(1)

    @pl.when(k == 0)
    def _init():
        acc_ref[...] = jnp.zeros_like(acc_ref)

    acc_ref[...] += jnp.dot(x_ref[...], wd_ref[...],
                            preferred_element_type=jnp.float32)

    @pl.when(k == nk - 1)
    def _store():
        dn_ref[...] = acc_ref[...].astype(dn_ref.dtype)


# --------------------------------------------------------------------------
# Main: out = x @ Wb^T + b + down @ Wu_scaled^T
# --------------------------------------------------------------------------
def _lora_main_kernel(x_ref, wb_ref, b_ref, dn_ref, wu_ref, o_ref, acc_ref):
    # x_ref:  (tm, tk)     wb_ref: (tk, tn)     b_ref: (1, tn)
    # dn_ref: (tm, r_pad)  wu_ref: (r_pad, tn)  o_ref: (tm, tn)
    k = pl.program_id(2)
    nk = pl.num_programs(2)

    @pl.when(k == 0)
    def _init():
        # Fold bias + LoRA-up pass into the accumulator init (k==0) so the
        # final k step only has the base matmul + store.
        lora = jnp.dot(dn_ref[...], wu_ref[...],
                       preferred_element_type=jnp.float32)
        acc_ref[...] = lora + b_ref[...].astype(jnp.float32)

    acc_ref[...] += jnp.dot(x_ref[...], wb_ref[...],
                            preferred_element_type=jnp.float32)

    @pl.when(k == nk - 1)
    def _store():
        o_ref[...] = acc_ref[...].astype(o_ref.dtype)


# --------------------------------------------------------------------------
# One-time weight preparation (transpose / pad / fold scaling) -- NOT per call
# --------------------------------------------------------------------------
def prepare_lora_linear_params(w_base, b_base, w_down, w_up, *, alpha=1.0,
                               tn=512, tk=1024, param_dtype=None):
    """w_base: (out, in)  b_base: (out,)  w_down: (r, in)  w_up: (out, r).

    Use param_dtype=jnp.bfloat16 on v6e/v7x for 2x MXU / DMA (x is then cast
    to bf16 in the wrapper automatically).
    """
    out_f, in_f = w_base.shape
    r = w_down.shape[0]
    scaling = float(alpha) / float(r)

    if param_dtype is None:
        param_dtype = w_base.dtype

    # Clamp tiles for small layers; keep 128-multiples (256-multiples preferred
    # on v6e/v7x, which the 512/1024 defaults already satisfy).
    tn = min(tn, _round_up(out_f, 128))
    tk = min(tk, _round_up(in_f, 128))
    n_pad = _round_up(out_f, tn)
    k_pad = _round_up(in_f, tk)
    r_pad = _round_up(r, 128)   # lane-dense rank dimension

    wb_t = jnp.zeros((k_pad, n_pad), param_dtype)
    wb_t = wb_t.at[:in_f, :out_f].set(w_base.T.astype(param_dtype))

    wd_t = jnp.zeros((k_pad, r_pad), param_dtype)
    wd_t = wd_t.at[:in_f, :r].set(w_down.T.astype(param_dtype))

    # Fold the LoRA scaling into the up weight (weight-only, one time).
    wu_scaled = (w_up.astype(jnp.float32).T * scaling).astype(param_dtype)
    wu_t = jnp.zeros((r_pad, n_pad), param_dtype)
    wu_t = wu_t.at[:r, :out_f].set(wu_scaled)

    bias = jnp.zeros((1, n_pad), param_dtype)
    bias = bias.at[0, :out_f].set(b_base.astype(param_dtype))

    return dict(wb_t=wb_t, wd_t=wd_t, wu_t=wu_t, bias=bias,
                in_f=in_f, out_f=out_f, tn=tn, tk=tk, r_pad=r_pad)


def lora_linear(x, params, *, tm=512):
    """Fused LoRALinear forward: x @ Wb^T + b + scaling * (x @ Wd^T) @ Wu^T.

    x: (..., in_features).  Large tm cuts W_base HBM re-reads on every
    generation (v5e, the most HBM-starved, benefits the most).
    """
    in_f, out_f = params["in_f"], params["out_f"]
    tn, tk, r_pad = params["tn"], params["tk"], params["r_pad"]
    wb_t, wd_t, wu_t, bias = (params["wb_t"], params["wd_t"],
                              params["wu_t"], params["bias"])
    k_pad, n_pad = wb_t.shape
    pdtype = wb_t.dtype

    orig_shape = x.shape
    x2d = x.reshape(-1, in_f)
    M = x2d.shape[0]

    # Run the MXU path in bf16 end-to-end when the params are bf16.
    compute_dtype = pdtype if pdtype == jnp.bfloat16 else x2d.dtype

    # bf16 min sublane tile is (16, 128): round the M tile to 16 in that case.
    sub = 8 if jnp.dtype(compute_dtype).itemsize >= 4 else 16
    tm_eff = min(tm, _round_up(M, sub))
    m_pad = _round_up(M, tm_eff)

    # Fast path: skip the pad round trip when already aligned.
    if M == m_pad and in_f == k_pad and x2d.dtype == compute_dtype:
        x_p = x2d
    else:
        x_p = jnp.zeros((m_pad, k_pad), compute_dtype)
        x_p = x_p.at[:M, :in_f].set(x2d.astype(compute_dtype))

    cb = jnp.dtype(compute_dtype).itemsize
    pb = jnp.dtype(pdtype).itemsize
    vmem_cap = _vmem_cap_bytes()

    # ---------------- prologue: down projection (M x r_pad) -----------------
    dn_grid = (m_pad // tm_eff, k_pad // tk)
    dn_tile_bytes = 2 * (tm_eff * tk * cb + tk * r_pad * pb
                         + tm_eff * r_pad * cb) + 4 * tm_eff * r_pad
    dn_vmem = min(int(dn_tile_bytes * 1.5) + (4 << 20), vmem_cap)

    down = pl.pallas_call(
        _lora_down_kernel,
        out_shape=jax.ShapeDtypeStruct((m_pad, r_pad), compute_dtype),
        grid_spec=pltpu.PrefetchScalarGridSpec(
            num_scalar_prefetch=0,
            grid=dn_grid,
            in_specs=[
                pl.BlockSpec((tm_eff, tk), lambda i, k: (i, k)),
                pl.BlockSpec((tk, r_pad), lambda i, k: (k, 0)),
            ],
            out_specs=pl.BlockSpec((tm_eff, r_pad), lambda i, k: (i, 0)),
            scratch_shapes=[pltpu.VMEM((tm_eff, r_pad), jnp.float32)],
        ),
        compiler_params=pltpu.CompilerParams(
            dimension_semantics=("parallel", "arbitrary"),
            vmem_limit_bytes=dn_vmem,
        ),
    )(x_p, wd_t)

    # ---------------- main: base matmul + bias + LoRA-up --------------------
    grid = (m_pad // tm_eff, n_pad // tn, k_pad // tk)
    tile_bytes = 2 * (tm_eff * tk * cb + tk * tn * pb + tn * pb
                      + tm_eff * r_pad * cb + r_pad * tn * pb
                      + tm_eff * tn * cb) + 4 * tm_eff * tn
    vmem_limit = min(int(tile_bytes * 1.5) + (4 << 20), vmem_cap)

    out_p = pl.pallas_call(
        _lora_main_kernel,
        out_shape=jax.ShapeDtypeStruct((m_pad, n_pad), x.dtype),
        grid_spec=pltpu.PrefetchScalarGridSpec(
            num_scalar_prefetch=0,
            grid=grid,
            in_specs=[
                pl.BlockSpec((tm_eff, tk), lambda i, j, k: (i, k)),   # x
                pl.BlockSpec((tk, tn), lambda i, j, k: (k, j)),       # W_base^T
                pl.BlockSpec((1, tn), lambda i, j, k: (0, j)),        # bias
                pl.BlockSpec((tm_eff, r_pad), lambda i, j, k: (i, 0)),  # down
                pl.BlockSpec((r_pad, tn), lambda i, j, k: (0, j)),    # Wu^T*scale
            ],
            out_specs=pl.BlockSpec((tm_eff, tn), lambda i, j, k: (i, j)),
            scratch_shapes=[pltpu.VMEM((tm_eff, tn), jnp.float32)],
        ),
        compiler_params=pltpu.CompilerParams(
            # Both M and N parallel (no cross-j carry anymore); K is the
            # reduction axis.
            dimension_semantics=("parallel", "parallel", "arbitrary"),
            vmem_limit_bytes=vmem_limit,
        ),
    )(x_p, wb_t, bias, down, wu_t)

    # Fast path: skip the slice when already aligned.
    if M == m_pad and out_f == n_pad:
        out = out_p
    else:
        out = out_p[:M, :out_f]
    return out.reshape(*orig_shape[:-1], out_f)


if __name__ == "__main__":
    # Small shapes consistent with the module: batch=2, seq=8, hidden=32.
    batch, seq, in_features, out_features, r, alpha = 2, 8, 32, 64, 8, 1.0

    key = jax.random.PRNGKey(0)
    kx, kwb, kbb, kwd, kwu = jax.random.split(key, 5)

    x = jax.random.normal(kx, (batch, seq, in_features), dtype=jnp.float32)
    w_base = jax.random.normal(kwb, (out_features, in_features), dtype=jnp.float32) * 0.1
    b_base = jax.random.normal(kbb, (out_features,), dtype=jnp.float32) * 0.1
    w_down = jax.random.normal(kwd, (r, in_features), dtype=jnp.float32) * 0.1
    w_up = jax.random.normal(kwu, (out_features, r), dtype=jnp.float32) * 0.1

    # One-time parameter preparation; per-call forward only runs the kernels.
    # (Use param_dtype=jnp.bfloat16 on v6e/v7x for 2x MXU / DMA; f32 here so
    #  the reference check below stays tight.)
    params = prepare_lora_linear_params(w_base, b_base, w_down, w_up, alpha=alpha)

    out = lora_linear(x, params)
    out = jax.block_until_ready(out)

    # Pure-JAX reference check of the LoRALinear forward semantics.
    scaling = alpha / r
    ref = (x @ w_base.T + b_base) + scaling * ((x @ w_down.T) @ w_up.T)
    assert out.shape == (batch, seq, out_features)
    assert jnp.allclose(out, ref, atol=1e-4, rtol=1e-4)

    print("KERNEL_OK")
</pallas_src>

<mosaic_0001>
module attributes {stable_mosaic.version = 11 : i64} {
  func.func @_lora_down_kernel(%arg0: i32, %arg1: i32, %arg2: memref<16x128xf32, #tpu.memory_space<vmem>>, %arg3: memref<128x128xf32, #tpu.memory_space<vmem>>, %arg4: memref<16x128xf32, #tpu.memory_space<vmem>>, %arg5: memref<16x128xf32, #tpu.memory_space<vmem>>) attributes {dimension_semantics = [#tpu.dimension_semantics<parallel>, #tpu.dimension_semantics<arbitrary>], iteration_bounds = array<i64: 1, 1>, scalar_prefetch = 0 : i64, scratch_operands = 1 : i64, tpu.core_type = #tpu.core_type<tc>, window_params = [{transform_indices = @transform_0, window_bounds = array<i64: 16, 128>}, {transform_indices = @transform_1, window_bounds = array<i64: 128, 128>}, {transform_indices = @transform_2, window_bounds = array<i64: 16, 128>}]} {
    %c0_i32 = arith.constant 0 : i32
    %0 = arith.cmpi eq, %arg1, %c0_i32 : i32
    %1 = arith.extui %0 : i1 to i32
    %c0_i32_0 = arith.constant 0 : i32
    %2 = arith.cmpi ne, %1, %c0_i32_0 : i32
    scf.if %2 {
      %cst_10 = arith.constant 0.000000e+00 : f32
      %12 = vector.broadcast %cst_10 : f32 to vector<16x128xf32>
      %c0_11 = arith.constant 0 : index
      %c0_12 = arith.constant 0 : index
      %13 = vector.load %arg5[%c0_11, %c0_12] : memref<16x128xf32, #tpu.memory_space<vmem>>, vector<16x128xf32>
      tpu.vector_store %arg5[%c0_11, %c0_12], %12 {strides = array<i32>} : memref<16x128xf32, #tpu.memory_space<vmem>>, vector<16x128xf32>,
    } else {
    }
    %c0 = arith.constant 0 : index
    %c0_1 = arith.constant 0 : index
    %3 = vector.load %arg5[%c0, %c0_1] : memref<16x128xf32, #tpu.memory_space<vmem>>, vector<16x128xf32>
    %c0_2 = arith.constant 0 : index
    %c0_3 = arith.constant 0 : index
    %4 = vector.load %arg2[%c0_2, %c0_3] : memref<16x128xf32, #tpu.memory_space<vmem>>, vector<16x128xf32>
    %c0_4 = arith.constant 0 : index
    %c0_5 = arith.constant 0 : index
    %5 = vector.load %arg3[%c0_4, %c0_5] : memref<128x128xf32, #tpu.memory_space<vmem>>, vector<128x128xf32>
    %cst = arith.constant dense<0.000000e+00> : vector<16x128xf32>
    %6 = tpu.matmul %4, %5, %cst {dimension_numbers = #tpu.dot_dimension_numbers<[1], [0], [0], [1], [0, 0, 1, 1], [], []>} : vector<16x128xf32>, vector<128x128xf32>, vector<16x128xf32> -> vector<16x128xf32>
    %7 = arith.addf %3, %6 : vector<16x128xf32>
    %c0_6 = arith.constant 0 : index
    %c0_7 = arith.constant 0 : index
    %8 = vector.load %arg5[%c0_6, %c0_7] : memref<16x128xf32, #tpu.memory_space<vmem>>, vector<16x128xf32>
    tpu.vector_store %arg5[%c0_6, %c0_7], %7 {strides = array<i32>} : memref<16x128xf32, #tpu.memory_space<vmem>>, vector<16x128xf32>,
    %c0_i32_8 = arith.constant 0 : i32
    %9 = arith.cmpi eq, %arg1, %c0_i32_8 : i32
    %10 = arith.extui %9 : i1 to i32
    %c0_i32_9 = arith.constant 0 : i32
    %11 = arith.cmpi ne, %10, %c0_i32_9 : i32
    scf.if %11 {
      %c0_10 = arith.constant 0 : index
      %c0_11 = arith.constant 0 : index
      %12 = vector.load %arg5[%c0_10, %c0_11] : memref<16x128xf32, #tpu.memory_space<vmem>>, vector<16x128xf32>
      %c0_12 = arith.constant 0 : index
      %c0_13 = arith.constant 0 : index
      %13 = vector.load %arg4[%c0_12, %c0_13] : memref<16x128xf32, #tpu.memory_space<vmem>>, vector<16x128xf32>
      tpu.vector_store %arg4[%c0_12, %c0_13], %12 {strides = array<i32>} : memref<16x128xf32, #tpu.memory_space<vmem>>, vector<16x128xf32>,
    } else {
    }
    return
  }
  func.func @transform_0(%arg0: i32, %arg1: i32) -> (i32, i32) {
    %c0_i32 = arith.constant 0 : i32
    return %arg0, %arg1 : i32, i32
  }
  func.func @transform_1(%arg0: i32, %arg1: i32) -> (i32, i32) {
    %c0_i32 = arith.constant 0 : i32
    %c0_i32_0 = arith.constant 0 : i32
    return %arg1, %c0_i32 : i32, i32
  }
  func.func @transform_2(%arg0: i32, %arg1: i32) -> (i32, i32) {
    %c0_i32 = arith.constant 0 : i32
    %c0_i32_0 = arith.constant 0 : i32
    return %arg0, %c0_i32 : i32, i32
  }
}

</mosaic_0001>

<bundles_post_ra>
// kernel: tpu_custom_call.1
= control target key start
LH: loop header
LB: loop body
LE: loop exit
PB: predicated region body
PF: predicated region fallthrough
CT: control target
= control target key end

     0   :  { %7 = vsyncpa [#allocation4], 0  ;;  %s332_s0 = inlined_call_operand.hbm [shape: f32[16,128], index: 0, kind: input, shape index: {}]   ;;  %s333_s1 = inlined_call_operand.hbm [shape: f32[128,128], index: 1, kind: input, shape index: {}]   ;;  %s334_s2 = inlined_call_operand.hbm [shape: f32[16,128], index: 2, kind: output, shape index: {}]  }
   0x1   :  { %8 = vsyncpa [#allocation7], 0 }
   0x2   :  { %9 = vsyncpa [#allocation5], 0  ;;  %s294_s9 = smov [#allocation3]  }
   0x3   :  { %s15_s10 = sshll.u32 %s294_s9, 4  ;;  %s16_s10 = int_to_ptr.vmem [resolvable:$true] %s15_s10 }
   0x4   :  { %s236_s11 = scalar_lea.vmem %s16_s10, 256  ;;  %p241_p1 = scmp.lt.s32.totalorder %s16_s10, %s16_s10 }
   0x5   :  { %p237_p0 = scmp.ne.s32.totalorder %s16_s10, %s236_s11  ;;  %p242_p2 = scmp.lt.s32.totalorder %s236_s11, %s236_s11 }
   0x7   :  { %p243_p3 = por %p242_p2, %p241_p1 }
   0x9   :  { %p244_p4 = pnand %p243_p3, %p237_p0 }
   0xb   :  { %247 = shalt.err (!%p244_p4)
}
   0xc   :  { %s295_s12 = smov 128   ;;  %s296_s13 = smov 8  }
   0xd   :  { %21 = dma.hbm_to_vmem [thread:$0]  %s332_s0, 256, %s16_s10, [#allocation4], %s295_s12, %s295_s12, %s296_s13  }
   0xe   :  { %s297_s16 = smov [#allocation6]  }
   0xf   :  { %s27_s17 = sshll.u32 %s297_s16, 4  ;;  %s28_s17 = int_to_ptr.vmem [resolvable:$true] %s27_s17 }
  0x10   :  { %s256_s18 = scalar_lea.vmem %s28_s17, 2048  ;;  %p261_p6 = scmp.lt.s32.totalorder %s28_s17, %s28_s17 }
  0x11   :  { %p257_p5 = scmp.ne.s32.totalorder %s28_s17, %s256_s18  ;;  %p262_p7 = scmp.lt.s32.totalorder %s256_s18, %s256_s18 }
  0x13   :  { %p263_p8 = por %p262_p7, %p261_p6 }
  0x15   :  { %p264_p9 = pnand %p263_p8, %p257_p5 }
  0x17   :  { %267 = shalt.err (!%p264_p9)
}
  0x18   :  { %33 = dma.hbm_to_vmem [thread:$0]  %s333_s1, 2048, %s28_s17, [#allocation7], %s295_s12, %s295_s12, %s296_s13  }
  0x19   :  { %288 = dma.done.wait [#allocation4], 256  }
  0x1a   :  { %289 = vsyncadd [#allocation4], 4294967040 }
  0x1b   :  { %290 = dma.done.wait [#allocation7], 2048  }
  0x1c   :  { %291 = vsyncadd [#allocation7], 4294965248  ;;  %v65_v0 = vld [vmem:[#allocation6 + $0x78] sm:$0xff]  ;;  %v64_v1 = vld [vmem:[#allocation6 + $0x70] sm:$0xff]  ;;  %s298_s0 = smov [#allocation8]  }
  0x1d   :  { %188 = vmatprep.subr.mxu0 %v65_v0  ;;  %v63_v2 = vld [vmem:[#allocation6 + $0x68] sm:$0xff]  ;;  %v62_v3 = vld [vmem:[#allocation6 + $0x60] sm:$0xff]  ;;  %v48_v4 = vld [vmem:[#allocation3] sm:$0xff]  ;;  %s157_s1 = sshll.u32 %s298_s0, 4  ;;  %s158_s1 = int_to_ptr.vmem [resolvable:$true] %s157_s1 }
  0x1e   :  { %189 = vmatpush3.msra.mxu0 %v65_v0  ;;  %v61_v5 = vld [vmem:[#allocation6 + $0x58] sm:$0xff]  ;;  %220 = vmatprep.mubr.f32.mxu0 %v48_v4  ;;  %v60_v6 = vld [vmem:[#allocation6 + $0x50] sm:$0xff]  ;;  %v59_v7 = vld [vmem:[#allocation6 + $0x48] sm:$0xff]  ;;  %s268_s21 = scalar_lea.vmem %s158_s1, 256  ;;  %p273_p11 = scmp.lt.s32.totalorder %s158_s1, %s158_s1 }
  0x1f   :  { %190 = vmatprep.subr.mxu0 %v64_v1  ;;  %v58_v8 = vld [vmem:[#allocation6 + $0x40] sm:$0xff]  ;;  %v57_v9 = vld [vmem:[#allocation6 + $0x38] sm:$0xff]  ;;  %v56_v10 = vld [vmem:[#allocation6 + $0x30] sm:$0xff]  ;;  %p269_p10 = scmp.ne.s32.totalorder %s158_s1, %s268_s21  ;;  %p274_p12 = scmp.lt.s32.totalorder %s268_s21, %s268_s21 }
  0x20   :  { %191 = vmatpush3.msra.mxu0 %v64_v1  ;;  %v55_v11 = vld [vmem:[#allocation6 + $0x28] sm:$0xff]  ;;  %v54_v12 = vld [vmem:[#allocation6 + $0x20] sm:$0xff]  ;;  %v53_v13 = vld [vmem:[#allocation6 + $0x18] sm:$0xff] }
  0x21   :  { %192 = vmatprep.subr.mxu0 %v63_v2  ;;  %v52_v14 = vld [vmem:[#allocation6 + $0x10] sm:$0xff]  ;;  %v51_v15 = vld [vmem:[#allocation6 + $0x8] sm:$0xff]  ;;  %v50_v16 = vld [vmem:[#allocation6] sm:$0xff]  ;;  %p275_p13 = por %p274_p12, %p273_p11 }
  0x22   :  { %193 = vmatpush3.msra.mxu0 %v63_v2  ;;  %v49_v17 = vld [vmem:[#allocation3 + $0x8] sm:$0xff] }
  0x23   :  { %194 = vmatprep.subr.mxu0 %v62_v3  ;;  %p276_p0 = pnand %p275_p13, %p269_p10 }
  0x24   :  { %195 = vmatpush3.msra.mxu0 %v62_v3 }
  0x25   :  { %196 = vmatprep.subr.mxu0 %v61_v5 }
  0x26   :  { %197 = vmatpush3.msra.mxu0 %v61_v5 }
  0x27   :  { %198 = vmatprep.subr.mxu0 %v60_v6 }
  0x28   :  { %199 = vmatpush3.msra.mxu0 %v60_v6 }
  0x29   :  { %200 = vmatprep.subr.mxu0 %v59_v7 }
  0x2a   :  { %201 = vmatpush3.msra.mxu0 %v59_v7 }
  0x2b   :  { %202 = vmatprep.subr.mxu0 %v58_v8 }
  0x2c   :  { %203 = vmatpush3.msra.mxu0 %v58_v8 }
  0x2d   :  { %204 = vmatprep.subr.mxu0 %v57_v9 }
  0x2e   :  { %205 = vmatpush3.msra.mxu0 %v57_v9 }
  0x2f   :  { %206 = vmatprep.subr.mxu0 %v56_v10 }
  0x30   :  { %207 = vmatpush3.msra.mxu0 %v56_v10 }
  0x31   :  { %208 = vmatprep.subr.mxu0 %v55_v11 }
  0x32   :  { %209 = vmatpush3.msra.mxu0 %v55_v11 }
  0x33   :  { %210 = vmatprep.subr.mxu0 %v54_v12 }
  0x34   :  { %211 = vmatpush3.msra.mxu0 %v54_v12 }
  0x35   :  { %212 = vmatprep.subr.mxu0 %v53_v13 }
  0x36   :  { %213 = vmatpush3.msra.mxu0 %v53_v13 }
  0x37   :  { %214 = vmatprep.subr.mxu0 %v52_v14 }
  0x38   :  { %215 = vmatpush3.msra.mxu0 %v52_v14 }
  0x39   :  { %216 = vmatprep.subr.mxu0 %v51_v15 }
  0x3a   :  { %217 = vmatpush3.msra.mxu0 %v51_v15 }
  0x3b   :  { %218 = vmatprep.subr.mxu0 %v50_v16 }
  0x3c   :  { %219 = vmatpush3.msra.mxu0 %v50_v16 }
  0x3d   :  { %221 = vmatmul.mubr.f32.vlgmr.msra.gmra.mxu0 %v49_v17 }
  0xfd   :  { %v222_v18 = vpop.f32.mrf.mxu0 }
  0xfe   :  { %151 = vst [vmem:[#allocation8 + $0x8] sm:$0xff] %v222_v18 }
  0xff   :  { %v132_v19 = vpop.f32.mrf.mxu0 }
 0x100   :  { %150 = vst [vmem:[#allocation8] sm:$0xff] %v132_v19 }
 0x101   :  { %279 = shalt.err (!%p276_p0)
}
 0x102   :  { %163 = dma.vmem_to_hbm [thread:$0]  %s158_s1, 256, %s334_s2, [#allocation5], %s295_s12, %s295_s12, %s296_s13  }
 0x103   :  { %292 = dma.done.wait [#allocation5], 256  }
 0x104   :  { %293 = vsyncadd [#allocation5], 4294967040 }
 0x105   :  { %167 = vsyncpa [#allocation4], 1 }
 0x106   :  { %168 = vsyncpa [#allocation7], 1 }
 0x107   :  { %169 = vsyncpa [#allocation5], 1 }

</bundles_post_ra>
